<compile_context>
chip_gen: v6e
topology: v6e:2x2x1
jax: 0.10.0
libtpu: 0.0.40
codegen_flags: <defaults>
</compile_context>

<pallas_src>
import functools

import jax
import jax.numpy as jnp
import numpy as np
from jax.experimental import pallas as pl
from jax.experimental.pallas import tpu as pltpu


def _tconv_kernel(x_ref, w_ref, shift_ref, o_ref):
    # x_ref:     (T, cin, HW)        bf16, native input layout for batch b
    # w_ref:     (3, cout, cin)      bf16, conv weight with BN scale folded in
    # shift_ref: (cout, 1)           f32, folded BN shift = beta - mean * scale
    # o_ref:     (T_out, cout, HW)   f32, final output layout for batch b
    t_out = o_ref.shape[0]
    shift = shift_ref[...]                       # hoisted: one load, reused per frame
    w0 = w_ref[0]
    w1 = w_ref[1]
    w2 = w_ref[2]
    for t in range(t_out):                       # static, fully unrolled
        acc = jnp.dot(w0, x_ref[t], preferred_element_type=jnp.float32)
        acc = acc + jnp.dot(w1, x_ref[t + 1], preferred_element_type=jnp.float32)
        acc = acc + jnp.dot(w2, x_ref[t + 2], preferred_element_type=jnp.float32)
        y = acc + shift                          # BN (inference, folded scale)
        o_ref[t] = jnp.maximum(y, 0.0).astype(o_ref.dtype)   # ReLU, lane-dense store


def prepare_tconv_params(weight, gamma, beta, run_mean, run_var, eps=1e-5):
    """Fold BN scale into the conv weight.  Call ONCE at parameter-load time."""
    cout, cin = weight.shape[0], weight.shape[1]
    scale = gamma / jnp.sqrt(run_var + eps)                               # (cout,)
    shift = (beta - run_mean * scale).reshape(cout, 1).astype(jnp.float32)
    w_scaled = weight.reshape(cout, cin, 3) * scale[:, None, None]        # (cout,cin,3)
    w_koi = jnp.transpose(w_scaled, (2, 0, 1)).astype(jnp.bfloat16)       # (3,cout,cin)
    return w_koi, shift


@functools.partial(jax.jit, static_argnames=("T",))
def tconv_forward(x, w_koi, shift, T):
    """x: (BS*T, cin, H, W) NCHW f32.  w_koi: (3, cout, cin) bf16.  shift: (cout,1) f32."""
    BS_T, C, H, W = x.shape
    BS = BS_T // T
    HW = H * W
    T_out = T - 2
    cout = w_koi.shape[1]

    # Pure reshape + cast (no transpose, no extra HBM pass beyond the cast).
    x_btc = x.reshape(BS, T, C, HW).astype(jnp.bfloat16)

    out = pl.pallas_call(
        _tconv_kernel,
        out_shape=jax.ShapeDtypeStruct((BS, T_out, cout, HW), jnp.float32),
        grid=(BS,),
        in_specs=[
            pl.BlockSpec((None, T, C, HW), lambda b: (b, 0, 0, 0)),
            pl.BlockSpec((3, cout, C), lambda b: (0, 0, 0)),
            pl.BlockSpec((cout, 1), lambda b: (0, 0)),
        ],
        out_specs=pl.BlockSpec((None, T_out, cout, HW), lambda b: (b, 0, 0, 0)),
        compiler_params=pltpu.CompilerParams(
            dimension_semantics=("parallel",)
        ),
    )(x_btc, w_koi, shift)

    # Output is already (BS, T_out, cout, HW) == PyTorch's post-transpose layout.
    return out.reshape(BS * T_out, cout, H, W)


def tconv_reference(x, weight, gamma, beta, run_mean, run_var, T, eps=1e-5):
    """Pure-JAX f32 reference mirroring the PyTorch forward (BN in eval mode)."""
    BS_T, C, H, W = x.shape
    BS = BS_T // T
    HW = H * W
    T_out = T - 2
    cout = weight.shape[0]
    xr = x.reshape(BS, T, C, HW)
    ws = weight.reshape(cout, C, 3)
    y = jnp.zeros((BS, T_out, cout, HW), jnp.float32)
    for kt in range(3):
        y = y + jnp.einsum("oi,btil->btol", ws[:, :, kt], xr[:, kt:kt + T_out])
    scale = gamma / jnp.sqrt(run_var + eps)
    shift = beta - run_mean * scale
    y = y * scale[None, None, :, None] + shift[None, None, :, None]
    y = jnp.maximum(y, 0.0)
    return y.reshape(BS * T_out, cout, H, W)


if __name__ == "__main__":
    # Small shapes consistent with the module: T=8, cin=4, cout=8, H=W=16, BS=2.
    T, cin, cout = 8, 4, 8
    BS, H, W = 2, 16, 16

    key = jax.random.PRNGKey(0)
    kx, kw, kg, kb, km, kv = jax.random.split(key, 6)

    x = jax.random.normal(kx, (BS * T, cin, H, W), dtype=jnp.float32)
    weight = jax.random.normal(kw, (cout, cin, 3, 1), dtype=jnp.float32) * 0.1
    gamma = 1.0 + 0.1 * jax.random.normal(kg, (cout,), dtype=jnp.float32)
    beta = 0.1 * jax.random.normal(kb, (cout,), dtype=jnp.float32)
    run_mean = 0.1 * jax.random.normal(km, (cout,), dtype=jnp.float32)
    run_var = 0.5 + jax.random.uniform(kv, (cout,), dtype=jnp.float32)

    # BN folding done once, outside the per-call forward path.
    w_koi, shift = prepare_tconv_params(weight, gamma, beta, run_mean, run_var)

    out = tconv_forward(x, w_koi, shift, T)
    out = jax.block_until_ready(out)

    ref = tconv_reference(x, weight, gamma, beta, run_mean, run_var, T)
    assert out.shape == (BS * (T - 2), cout, H, W), out.shape
    # bf16 operand feed (f32 accumulate) -> loosened tolerance vs the f32 reference.
    np.testing.assert_allclose(np.asarray(out), np.asarray(ref), rtol=2e-2, atol=1e-2)

    print("KERNEL_OK")
</pallas_src>

<mosaic_0001>
module attributes {stable_mosaic.version = 11 : i64} {
  func.func @_tconv_kernel(%arg0: i32, %arg1: memref<1x8x4x256xbf16, #tpu.memory_space<vmem>>, %arg2: memref<3x8x4xbf16, #tpu.memory_space<vmem>>, %arg3: memref<8x1xf32, #tpu.memory_space<vmem>>, %arg4: memref<1x6x8x256xf32, #tpu.memory_space<vmem>>) attributes {dimension_semantics = [#tpu.dimension_semantics<parallel>], iteration_bounds = array<i64: 2>, scalar_prefetch = 0 : i64, scratch_operands = 0 : i64, tpu.core_type = #tpu.core_type<tc>, window_params = [{transform_indices = @transform_0, window_bounds = array<i64: 1, 8, 4, 256>}, {pipeline_mode = #tpu.pipeline_mode<synchronous>, transform_indices = @transform_1, window_bounds = array<i64: 3, 8, 4>}, {pipeline_mode = #tpu.pipeline_mode<synchronous>, transform_indices = @transform_2, window_bounds = array<i64: 8, 1>}, {transform_indices = @transform_3, window_bounds = array<i64: 1, 6, 8, 256>}]} {
    %c0 = arith.constant 0 : index
    %c0_0 = arith.constant 0 : index
    %0 = vector.load %arg3[%c0, %c0_0] : memref<8x1xf32, #tpu.memory_space<vmem>>, vector<8x1xf32>
    %c0_1 = arith.constant 0 : index
    %c0_2 = arith.constant 0 : index
    %c0_3 = arith.constant 0 : index
    %1 = vector.load %arg2[%c0_1, %c0_2, %c0_3] : memref<3x8x4xbf16, #tpu.memory_space<vmem>>, vector<1x8x4xbf16>
    %2 = vector.shape_cast %1 : vector<1x8x4xbf16> to vector<8x4xbf16>
    %c1 = arith.constant 1 : index
    %c0_4 = arith.constant 0 : index
    %c0_5 = arith.constant 0 : index
    %3 = vector.load %arg2[%c1, %c0_4, %c0_5] : memref<3x8x4xbf16, #tpu.memory_space<vmem>>, vector<1x8x4xbf16>
    %4 = vector.shape_cast %3 : vector<1x8x4xbf16> to vector<8x4xbf16>
    %c2 = arith.constant 2 : index
    %c0_6 = arith.constant 0 : index
    %c0_7 = arith.constant 0 : index
    %5 = vector.load %arg2[%c2, %c0_6, %c0_7] : memref<3x8x4xbf16, #tpu.memory_space<vmem>>, vector<1x8x4xbf16>
    %6 = vector.shape_cast %5 : vector<1x8x4xbf16> to vector<8x4xbf16>
    %c0_8 = arith.constant 0 : index
    %c0_9 = arith.constant 0 : index
    %c0_10 = arith.constant 0 : index
    %c0_11 = arith.constant 0 : index
    %7 = vector.load %arg1[%c0_8, %c0_9, %c0_10, %c0_11] : memref<1x8x4x256xbf16, #tpu.memory_space<vmem>>, vector<1x1x4x256xbf16>
    %8 = vector.shape_cast %7 : vector<1x1x4x256xbf16> to vector<4x256xbf16>
    %cst = arith.constant dense<0.000000e+00> : vector<8x256xf32>
    %9 = tpu.matmul %2, %8, %cst {dimension_numbers = #tpu.dot_dimension_numbers<[1], [0], [0], [1], [0, 0, 1, 1], [], []>} : vector<8x4xbf16>, vector<4x256xbf16>, vector<8x256xf32> -> vector<8x256xf32>
    %c0_12 = arith.constant 0 : index
    %c1_13 = arith.constant 1 : index
    %c0_14 = arith.constant 0 : index
    %c0_15 = arith.constant 0 : index
    %10 = vector.load %arg1[%c0_12, %c1_13, %c0_14, %c0_15] : memref<1x8x4x256xbf16, #tpu.memory_space<vmem>>, vector<1x1x4x256xbf16>
    %11 = vector.shape_cast %10 : vector<1x1x4x256xbf16> to vector<4x256xbf16>
    %cst_16 = arith.constant dense<0.000000e+00> : vector<8x256xf32>
    %12 = tpu.matmul %4, %11, %cst_16 {dimension_numbers = #tpu.dot_dimension_numbers<[1], [0], [0], [1], [0, 0, 1, 1], [], []>} : vector<8x4xbf16>, vector<4x256xbf16>, vector<8x256xf32> -> vector<8x256xf32>
    %13 = arith.addf %9, %12 : vector<8x256xf32>
    %c0_17 = arith.constant 0 : index
    %c2_18 = arith.constant 2 : index
    %c0_19 = arith.constant 0 : index
    %c0_20 = arith.constant 0 : index
    %14 = vector.load %arg1[%c0_17, %c2_18, %c0_19, %c0_20] : memref<1x8x4x256xbf16, #tpu.memory_space<vmem>>, vector<1x1x4x256xbf16>
    %15 = vector.shape_cast %14 : vector<1x1x4x256xbf16> to vector<4x256xbf16>
    %cst_21 = arith.constant dense<0.000000e+00> : vector<8x256xf32>
    %16 = tpu.matmul %6, %15, %cst_21 {dimension_numbers = #tpu.dot_dimension_numbers<[1], [0], [0], [1], [0, 0, 1, 1], [], []>} : vector<8x4xbf16>, vector<4x256xbf16>, vector<8x256xf32> -> vector<8x256xf32>
    %17 = arith.addf %13, %16 : vector<8x256xf32>
    %18 = vector.broadcast %0 : vector<8x1xf32> to vector<8x256xf32>
    %19 = arith.addf %17, %18 : vector<8x256xf32>
    %cst_22 = arith.constant 0.000000e+00 : f32
    %20 = vector.broadcast %cst_22 : f32 to vector<8x256xf32>
    %21 = arith.maximumf %19, %20 : vector<8x256xf32>
    %c0_23 = arith.constant 0 : index
    %c0_24 = arith.constant 0 : index
    %c0_25 = arith.constant 0 : index
    %c0_26 = arith.constant 0 : index
    %22 = vector.load %arg4[%c0_23, %c0_24, %c0_25, %c0_26] : memref<1x6x8x256xf32, #tpu.memory_space<vmem>>, vector<1x1x8x256xf32>
    %23 = vector.shape_cast %22 : vector<1x1x8x256xf32> to vector<8x256xf32>
    %24 = vector.shape_cast %21 : vector<8x256xf32> to vector<1x1x8x256xf32>
    tpu.vector_store %arg4[%c0_23, %c0_24, %c0_25, %c0_26], %24 {strides = array<i32>} : memref<1x6x8x256xf32, #tpu.memory_space<vmem>>, vector<1x1x8x256xf32>,
    %c0_27 = arith.constant 0 : index
    %c1_28 = arith.constant 1 : index
    %c0_29 = arith.constant 0 : index
    %c0_30 = arith.constant 0 : index
    %25 = vector.load %arg1[%c0_27, %c1_28, %c0_29, %c0_30] : memref<1x8x4x256xbf16, #tpu.memory_space<vmem>>, vector<1x1x4x256xbf16>
    %26 = vector.shape_cast %25 : vector<1x1x4x256xbf16> to vector<4x256xbf16>
    %cst_31 = arith.constant dense<0.000000e+00> : vector<8x256xf32>
    %27 = tpu.matmul %2, %26, %cst_31 {dimension_numbers = #tpu.dot_dimension_numbers<[1], [0], [0], [1], [0, 0, 1, 1], [], []>} : vector<8x4xbf16>, vector<4x256xbf16>, vector<8x256xf32> -> vector<8x256xf32>
    %c0_32 = arith.constant 0 : index
    %c2_33 = arith.constant 2 : index
    %c0_34 = arith.constant 0 : index
    %c0_35 = arith.constant 0 : index
    %28 = vector.load %arg1[%c0_32, %c2_33, %c0_34, %c0_35] : memref<1x8x4x256xbf16, #tpu.memory_space<vmem>>, vector<1x1x4x256xbf16>
    %29 = vector.shape_cast %28 : vector<1x1x4x256xbf16> to vector<4x256xbf16>
    %cst_36 = arith.constant dense<0.000000e+00> : vector<8x256xf32>
    %30 = tpu.matmul %4, %29, %cst_36 {dimension_numbers = #tpu.dot_dimension_numbers<[1], [0], [0], [1], [0, 0, 1, 1], [], []>} : vector<8x4xbf16>, vector<4x256xbf16>, vector<8x256xf32> -> vector<8x256xf32>
    %31 = arith.addf %27, %30 : vector<8x256xf32>
    %c0_37 = arith.constant 0 : index
    %c3 = arith.constant 3 : index
    %c0_38 = arith.constant 0 : index
    %c0_39 = arith.constant 0 : index
    %32 = vector.load %arg1[%c0_37, %c3, %c0_38, %c0_39] : memref<1x8x4x256xbf16, #tpu.memory_space<vmem>>, vector<1x1x4x256xbf16>
    %33 = vector.shape_cast %32 : vector<1x1x4x256xbf16> to vector<4x256xbf16>
    %cst_40 = arith.constant dense<0.000000e+00> : vector<8x256xf32>
    %34 = tpu.matmul %6, %33, %cst_40 {dimension_numbers = #tpu.dot_dimension_numbers<[1], [0], [0], [1], [0, 0, 1, 1], [], []>} : vector<8x4xbf16>, vector<4x256xbf16>, vector<8x256xf32> -> vector<8x256xf32>
    %35 = arith.addf %31, %34 : vector<8x256xf32>
    %36 = vector.broadcast %0 : vector<8x1xf32> to vector<8x256xf32>
    %37 = arith.addf %35, %36 : vector<8x256xf32>
    %cst_41 = arith.constant 0.000000e+00 : f32
    %38 = vector.broadcast %cst_41 : f32 to vector<8x256xf32>
    %39 = arith.maximumf %37, %38 : vector<8x256xf32>
    %c0_42 = arith.constant 0 : index
    %c1_43 = arith.constant 1 : index
    %c0_44 = arith.constant 0 : index
    %c0_45 = arith.constant 0 : index
    %40 = vector.load %arg4[%c0_42, %c1_43, %c0_44, %c0_45] : memref<1x6x8x256xf32, #tpu.memory_space<vmem>>, vector<1x1x8x256xf32>
    %41 = vector.shape_cast %40 : vector<1x1x8x256xf32> to vector<8x256xf32>
    %42 = vector.shape_cast %39 : vector<8x256xf32> to vector<1x1x8x256xf32>
    tpu.vector_store %arg4[%c0_42, %c1_43, %c0_44, %c0_45], %42 {strides = array<i32>} : memref<1x6x8x256xf32, #tpu.memory_space<vmem>>, vector<1x1x8x256xf32>,
    %c0_46 = arith.constant 0 : index
    %c2_47 = arith.constant 2 : index
    %c0_48 = arith.constant 0 : index
    %c0_49 = arith.constant 0 : index
    %43 = vector.load %arg1[%c0_46, %c2_47, %c0_48, %c0_49] : memref<1x8x4x256xbf16, #tpu.memory_space<vmem>>, vector<1x1x4x256xbf16>
    %44 = vector.shape_cast %43 : vector<1x1x4x256xbf16> to vector<4x256xbf16>
    %cst_50 = arith.constant dense<0.000000e+00> : vector<8x256xf32>
    %45 = tpu.matmul %2, %44, %cst_50 {dimension_numbers = #tpu.dot_dimension_numbers<[1], [0], [0], [1], [0, 0, 1, 1], [], []>} : vector<8x4xbf16>, vector<4x256xbf16>, vector<8x256xf32> -> vector<8x256xf32>
    %c0_51 = arith.constant 0 : index
    %c3_52 = arith.constant 3 : index
    %c0_53 = arith.constant 0 : index
    %c0_54 = arith.constant 0 : index
    %46 = vector.load %arg1[%c0_51, %c3_52, %c0_53, %c0_54] : memref<1x8x4x256xbf16, #tpu.memory_space<vmem>>, vector<1x1x4x256xbf16>
    %47 = vector.shape_cast %46 : vector<1x1x4x256xbf16> to vector<4x256xbf16>
    %cst_55 = arith.constant dense<0.000000e+00> : vector<8x256xf32>
    %48 = tpu.matmul %4, %47, %cst_55 {dimension_numbers = #tpu.dot_dimension_numbers<[1], [0], [0], [1], [0, 0, 1, 1], [], []>} : vector<8x4xbf16>, vector<4x256xbf16>, vector<8x256xf32> -> vector<8x256xf32>
    %49 = arith.addf %45, %48 : vector<8x256xf32>
    %c0_56 = arith.constant 0 : index
    %c4 = arith.constant 4 : index
    %c0_57 = arith.constant 0 : index
    %c0_58 = arith.constant 0 : index
    %50 = vector.load %arg1[%c0_56, %c4, %c0_57, %c0_58] : memref<1x8x4x256xbf16, #tpu.memory_space<vmem>>, vector<1x1x4x256xbf16>
    %51 = vector.shape_cast %50 : vector<1x1x4x256xbf16> to vector<4x256xbf16>
    %cst_59 = arith.constant dense<0.000000e+00> : vector<8x256xf32>
    %52 = tpu.matmul %6, %51, %cst_59 {dimension_numbers = #tpu.dot_dimension_numbers<[1], [0], [0], [1], [0, 0, 1, 1], [], []>} : vector<8x4xbf16>, vector<4x256xbf16>, vector<8x256xf32> -> vector<8x256xf32>
    %53 = arith.addf %49, %52 : vector<8x256xf32>
    %54 = vector.broadcast %0 : vector<8x1xf32> to vector<8x256xf32>
    %55 = arith.addf %53, %54 : vector<8x256xf32>
    %cst_60 = arith.constant 0.000000e+00 : f32
    %56 = vector.broadcast %cst_60 : f32 to vector<8x256xf32>
    %57 = arith.maximumf %55, %56 : vector<8x256xf32>
    %c0_61 = arith.constant 0 : index
    %c2_62 = arith.constant 2 : index
    %c0_63 = arith.constant 0 : index
    %c0_64 = arith.constant 0 : index
    %58 = vector.load %arg4[%c0_61, %c2_62, %c0_63, %c0_64] : memref<1x6x8x256xf32, #tpu.memory_space<vmem>>, vector<1x1x8x256xf32>
    %59 = vector.shape_cast %58 : vector<1x1x8x256xf32> to vector<8x256xf32>
    %60 = vector.shape_cast %57 : vector<8x256xf32> to vector<1x1x8x256xf32>
    tpu.vector_store %arg4[%c0_61, %c2_62, %c0_63, %c0_64], %60 {strides = array<i32>} : memref<1x6x8x256xf32, #tpu.memory_space<vmem>>, vector<1x1x8x256xf32>,
    %c0_65 = arith.constant 0 : index
    %c3_66 = arith.constant 3 : index
    %c0_67 = arith.constant 0 : index
    %c0_68 = arith.constant 0 : index
    %61 = vector.load %arg1[%c0_65, %c3_66, %c0_67, %c0_68] : memref<1x8x4x256xbf16, #tpu.memory_space<vmem>>, vector<1x1x4x256xbf16>
    %62 = vector.shape_cast %61 : vector<1x1x4x256xbf16> to vector<4x256xbf16>
    %cst_69 = arith.constant dense<0.000000e+00> : vector<8x256xf32>
    %63 = tpu.matmul %2, %62, %cst_69 {dimension_numbers = #tpu.dot_dimension_numbers<[1], [0], [0], [1], [0, 0, 1, 1], [], []>} : vector<8x4xbf16>, vector<4x256xbf16>, vector<8x256xf32> -> vector<8x256xf32>
    %c0_70 = arith.constant 0 : index
    %c4_71 = arith.constant 4 : index
    %c0_72 = arith.constant 0 : index
    %c0_73 = arith.constant 0 : index
    %64 = vector.load %arg1[%c0_70, %c4_71, %c0_72, %c0_73] : memref<1x8x4x256xbf16, #tpu.memory_space<vmem>>, vector<1x1x4x256xbf16>
    %65 = vector.shape_cast %64 : vector<1x1x4x256xbf16> to vector<4x256xbf16>
    %cst_74 = arith.constant dense<0.000000e+00> : vector<8x256xf32>
    %66 = tpu.matmul %4, %65, %cst_74 {dimension_numbers = #tpu.dot_dimension_numbers<[1], [0], [0], [1], [0, 0, 1, 1], [], []>} : vector<8x4xbf16>, vector<4x256xbf16>, vector<8x256xf32> -> vector<8x256xf32>
    %67 = arith.addf %63, %66 : vector<8x256xf32>
    %c0_75 = arith.constant 0 : index
    %c5 = arith.constant 5 : index
    %c0_76 = arith.constant 0 : index
    %c0_77 = arith.constant 0 : index
    %68 = vector.load %arg1[%c0_75, %c5, %c0_76, %c0_77] : memref<1x8x4x256xbf16, #tpu.memory_space<vmem>>, vector<1x1x4x256xbf16>
    %69 = vector.shape_cast %68 : vector<1x1x4x256xbf16> to vector<4x256xbf16>
    %cst_78 = arith.constant dense<0.000000e+00> : vector<8x256xf32>
    %70 = tpu.matmul %6, %69, %cst_78 {dimension_numbers = #tpu.dot_dimension_numbers<[1], [0], [0], [1], [0, 0, 1, 1], [], []>} : vector<8x4xbf16>, vector<4x256xbf16>, vector<8x256xf32> -> vector<8x256xf32>
    %71 = arith.addf %67, %70 : vector<8x256xf32>
    %72 = vector.broadcast %0 : vector<8x1xf32> to vector<8x256xf32>
    %73 = arith.addf %71, %72 : vector<8x256xf32>
    %cst_79 = arith.constant 0.000000e+00 : f32
    %74 = vector.broadcast %cst_79 : f32 to vector<8x256xf32>
    %75 = arith.maximumf %73, %74 : vector<8x256xf32>
    %c0_80 = arith.constant 0 : index
    %c3_81 = arith.constant 3 : index
    %c0_82 = arith.constant 0 : index
    %c0_83 = arith.constant 0 : index
    %76 = vector.load %arg4[%c0_80, %c3_81, %c0_82, %c0_83] : memref<1x6x8x256xf32, #tpu.memory_space<vmem>>, vector<1x1x8x256xf32>
    %77 = vector.shape_cast %76 : vector<1x1x8x256xf32> to vector<8x256xf32>
    %78 = vector.shape_cast %75 : vector<8x256xf32> to vector<1x1x8x256xf32>
    tpu.vector_store %arg4[%c0_80, %c3_81, %c0_82, %c0_83], %78 {strides = array<i32>} : memref<1x6x8x256xf32, #tpu.memory_space<vmem>>, vector<1x1x8x256xf32>,
    %c0_84 = arith.constant 0 : index
    %c4_85 = arith.constant 4 : index
    %c0_86 = arith.constant 0 : index
    %c0_87 = arith.constant 0 : index
    %79 = vector.load %arg1[%c0_84, %c4_85, %c0_86, %c0_87] : memref<1x8x4x256xbf16, #tpu.memory_space<vmem>>, vector<1x1x4x256xbf16>
    %80 = vector.shape_cast %79 : vector<1x1x4x256xbf16> to vector<4x256xbf16>
    %cst_88 = arith.constant dense<0.000000e+00> : vector<8x256xf32>
    %81 = tpu.matmul %2, %80, %cst_88 {dimension_numbers = #tpu.dot_dimension_numbers<[1], [0], [0], [1], [0, 0, 1, 1], [], []>} : vector<8x4xbf16>, vector<4x256xbf16>, vector<8x256xf32> -> vector<8x256xf32>
    %c0_89 = arith.constant 0 : index
    %c5_90 = arith.constant 5 : index
    %c0_91 = arith.constant 0 : index
    %c0_92 = arith.constant 0 : index
    %82 = vector.load %arg1[%c0_89, %c5_90, %c0_91, %c0_92] : memref<1x8x4x256xbf16, #tpu.memory_space<vmem>>, vector<1x1x4x256xbf16>
    %83 = vector.shape_cast %82 : vector<1x1x4x256xbf16> to vector<4x256xbf16>
    %cst_93 = arith.constant dense<0.000000e+00> : vector<8x256xf32>
    %84 = tpu.matmul %4, %83, %cst_93 {dimension_numbers = #tpu.dot_dimension_numbers<[1], [0], [0], [1], [0, 0, 1, 1], [], []>} : vector<8x4xbf16>, vector<4x256xbf16>, vector<8x256xf32> -> vector<8x256xf32>
    %85 = arith.addf %81, %84 : vector<8x256xf32>
    %c0_94 = arith.constant 0 : index
    %c6 = arith.constant 6 : index
    %c0_95 = arith.constant 0 : index
    %c0_96 = arith.constant 0 : index
    %86 = vector.load %arg1[%c0_94, %c6, %c0_95, %c0_96] : memref<1x8x4x256xbf16, #tpu.memory_space<vmem>>, vector<1x1x4x256xbf16>
    %87 = vector.shape_cast %86 : vector<1x1x4x256xbf16> to vector<4x256xbf16>
    %cst_97 = arith.constant dense<0.000000e+00> : vector<8x256xf32>
    %88 = tpu.matmul %6, %87, %cst_97 {dimension_numbers = #tpu.dot_dimension_numbers<[1], [0], [0], [1], [0, 0, 1, 1], [], []>} : vector<8x4xbf16>, vector<4x256xbf16>, vector<8x256xf32> -> vector<8x256xf32>
    %89 = arith.addf %85, %88 : vector<8x256xf32>
    %90 = vector.broadcast %0 : vector<8x1xf32> to vector<8x256xf32>
    %91 = arith.addf %89, %90 : vector<8x256xf32>
    %cst_98 = arith.constant 0.000000e+00 : f32
    %92 = vector.broadcast %cst_98 : f32 to vector<8x256xf32>
    %93 = arith.maximumf %91, %92 : vector<8x256xf32>
    %c0_99 = arith.constant 0 : index
    %c4_100 = arith.constant 4 : index
    %c0_101 = arith.constant 0 : index
    %c0_102 = arith.constant 0 : index
    %94 = vector.load %arg4[%c0_99, %c4_100, %c0_101, %c0_102] : memref<1x6x8x256xf32, #tpu.memory_space<vmem>>, vector<1x1x8x256xf32>
    %95 = vector.shape_cast %94 : vector<1x1x8x256xf32> to vector<8x256xf32>
    %96 = vector.shape_cast %93 : vector<8x256xf32> to vector<1x1x8x256xf32>
    tpu.vector_store %arg4[%c0_99, %c4_100, %c0_101, %c0_102], %96 {strides = array<i32>} : memref<1x6x8x256xf32, #tpu.memory_space<vmem>>, vector<1x1x8x256xf32>,
    %c0_103 = arith.constant 0 : index
    %c5_104 = arith.constant 5 : index
    %c0_105 = arith.constant 0 : index
    %c0_106 = arith.constant 0 : index
    %97 = vector.load %arg1[%c0_103, %c5_104, %c0_105, %c0_106] : memref<1x8x4x256xbf16, #tpu.memory_space<vmem>>, vector<1x1x4x256xbf16>
    %98 = vector.shape_cast %97 : vector<1x1x4x256xbf16> to vector<4x256xbf16>
    %cst_107 = arith.constant dense<0.000000e+00> : vector<8x256xf32>
    %99 = tpu.matmul %2, %98, %cst_107 {dimension_numbers = #tpu.dot_dimension_numbers<[1], [0], [0], [1], [0, 0, 1, 1], [], []>} : vector<8x4xbf16>, vector<4x256xbf16>, vector<8x256xf32> -> vector<8x256xf32>
    %c0_108 = arith.constant 0 : index
    %c6_109 = arith.constant 6 : index
    %c0_110 = arith.constant 0 : index
    %c0_111 = arith.constant 0 : index
    %100 = vector.load %arg1[%c0_108, %c6_109, %c0_110, %c0_111] : memref<1x8x4x256xbf16, #tpu.memory_space<vmem>>, vector<1x1x4x256xbf16>
    %101 = vector.shape_cast %100 : vector<1x1x4x256xbf16> to vector<4x256xbf16>
    %cst_112 = arith.constant dense<0.000000e+00> : vector<8x256xf32>
    %102 = tpu.matmul %4, %101, %cst_112 {dimension_numbers = #tpu.dot_dimension_numbers<[1], [0], [0], [1], [0, 0, 1, 1], [], []>} : vector<8x4xbf16>, vector<4x256xbf16>, vector<8x256xf32> -> vector<8x256xf32>
    %103 = arith.addf %99, %102 : vector<8x256xf32>
    %c0_113 = arith.constant 0 : index
    %c7 = arith.constant 7 : index
    %c0_114 = arith.constant 0 : index
    %c0_115 = arith.constant 0 : index
    %104 = vector.load %arg1[%c0_113, %c7, %c0_114, %c0_115] : memref<1x8x4x256xbf16, #tpu.memory_space<vmem>>, vector<1x1x4x256xbf16>
    %105 = vector.shape_cast %104 : vector<1x1x4x256xbf16> to vector<4x256xbf16>
    %cst_116 = arith.constant dense<0.000000e+00> : vector<8x256xf32>
    %106 = tpu.matmul %6, %105, %cst_116 {dimension_numbers = #tpu.dot_dimension_numbers<[1], [0], [0], [1], [0, 0, 1, 1], [], []>} : vector<8x4xbf16>, vector<4x256xbf16>, vector<8x256xf32> -> vector<8x256xf32>
    %107 = arith.addf %103, %106 : vector<8x256xf32>
    %108 = vector.broadcast %0 : vector<8x1xf32> to vector<8x256xf32>
    %109 = arith.addf %107, %108 : vector<8x256xf32>
    %cst_117 = arith.constant 0.000000e+00 : f32
    %110 = vector.broadcast %cst_117 : f32 to vector<8x256xf32>
    %111 = arith.maximumf %109, %110 : vector<8x256xf32>
    %c0_118 = arith.constant 0 : index
    %c5_119 = arith.constant 5 : index
    %c0_120 = arith.constant 0 : index
    %c0_121 = arith.constant 0 : index
    %112 = vector.load %arg4[%c0_118, %c5_119, %c0_120, %c0_121] : memref<1x6x8x256xf32, #tpu.memory_space<vmem>>, vector<1x1x8x256xf32>
    %113 = vector.shape_cast %112 : vector<1x1x8x256xf32> to vector<8x256xf32>
    %114 = vector.shape_cast %111 : vector<8x256xf32> to vector<1x1x8x256xf32>
    tpu.vector_store %arg4[%c0_118, %c5_119, %c0_120, %c0_121], %114 {strides = array<i32>} : memref<1x6x8x256xf32, #tpu.memory_space<vmem>>, vector<1x1x8x256xf32>,
    return
  }
  func.func @transform_0(%arg0: i32) -> (i32, i32, i32, i32) {
    %c0_i32 = arith.constant 0 : i32
    %c0_i32_0 = arith.constant 0 : i32
    %c0_i32_1 = arith.constant 0 : i32
    %c0_i32_2 = arith.constant 0 : i32
    return %arg0, %c0_i32, %c0_i32_0, %c0_i32_1 : i32, i32, i32, i32
  }
  func.func @transform_1(%arg0: i32) -> (i32, i32, i32) {
    %c0_i32 = arith.constant 0 : i32
    %c0_i32_0 = arith.constant 0 : i32
    %c0_i32_1 = arith.constant 0 : i32
    %c0_i32_2 = arith.constant 0 : i32
    return %c0_i32, %c0_i32_0, %c0_i32_1 : i32, i32, i32
  }
  func.func @transform_2(%arg0: i32) -> (i32, i32) {
    %c0_i32 = arith.constant 0 : i32
    %c0_i32_0 = arith.constant 0 : i32
    %c0_i32_1 = arith.constant 0 : i32
    return %c0_i32, %c0_i32_0 : i32, i32
  }
  func.func @transform_3(%arg0: i32) -> (i32, i32, i32, i32) {
    %c0_i32 = arith.constant 0 : i32
    %c0_i32_0 = arith.constant 0 : i32
    %c0_i32_1 = arith.constant 0 : i32
    %c0_i32_2 = arith.constant 0 : i32
    return %arg0, %c0_i32, %c0_i32_0, %c0_i32_1 : i32, i32, i32, i32
  }
}

</mosaic_0001>

<bundles_post_ra>
// kernel: tconv_forward.1
= control target key start
LH: loop header
LB: loop body
LE: loop exit
PB: predicated region body
PF: predicated region fallthrough
CT: control target
= control target key end

     0   :  { %s1469_s12 = smov 0   ;;  %s1627_s0 = inlined_call_operand.vmem [shape: bf16[2,8,4,256], index: 0, kind: input, shape index: {}]   ;;  %s1628_s1 = inlined_call_operand.vmem [shape: bf16[3,8,4], index: 1, kind: input, shape index: {}]   ;;  %s1629_s2 = inlined_call_operand.vmem [shape: f32[8,1], index: 2, kind: input, shape index: {}]   ;;  %s1630_s3 = inlined_call_operand.vmem [shape: f32[2,6,8,256], index: 3, kind: output, shape index: {}]  }
   0x1 LB: > { %s1335_s13 = sadd.s32 4294967295, %s1446_s12   ;;  %p1339_p0 = scmp.ge.s32.totalorder %s1446_s12, 1  ;;  %s1446_s12 = sphi %s1469_s12, %s13_s12  }
   0x2   : > { %p137_p1 = scmp.lt.s32.totalorder %s1446_s12, 3 }
   0x4   : > { %p138_p2 = pnand %p1339_p0, %p137_p1 }
   0x5   : > { %p161_p3 = scmp.lt.s32.totalorder (!%p138_p2), %s1335_s13, 1 }
   0x6   : > { %141 = sbr.rel (%p138_p2) target bundleno = 289 (0x121), region = 32 }
   0xb   : > { %v1448_v0 = vmov 0   ;;  %v172_v1 = vld [vmem:[%s1629_s2] sm:$0xff]  ;;  %s1632_s13 = smov (!%p161_p3, %s1335_s13), 1  ;;  %vm194_vm0 = vcmask 1041408   ;;  %vm190_vm1 = vcmask 31744  }
   0xc   : > { %233 = vmatprep.mubr.bf16.mxu0 %v1448_v0  ;;  %292 = vmatprep.mubr.bf16.mxu1 %v1448_v0  ;;  %s1428_s16 = sshll.u32 %s1632_s13, 5  ;;  %v1500_v9 = vld [vmem:[%s1628_s1 + $0x4] sm:$0xf]  ;;  %v1507_v12 = vld [vmem:[%s1628_s1] sm:$0xf]  ;;  %s1429_s26 = smul.u32 96, %s1632_s13 }
   0xd   : > { %1439 = vset.pattern.permute.xlu0 %v1448_v0  ;;  %s1489_s19 = scalar_lea.vmem %s1627_s0, %s1428_s16  ;;  %v1523_v15 = vld [vmem:[%s1628_s1 + $0x8] sm:$0xf] }
   0xe   : > { %366 = vperm.xlu0 %1439, %v172_v1   ;;  %v1346_v2 = vld.sshfl [vmem:[%s1489_s19 + $0x4] sm:$0x33 pattern:$0x76325410]  ;;  %s1599_s29 = scalar_lea.vmem %s1630_s3, %s1429_s26 }
   0xf   : > { %v189_v3 = vcombine.high %v1346_v2, %v1346_v2  ;;  %v1349_v4 = vld.sshfl [vmem:[%s1489_s19] sm:$0x33 pattern:$0x76325410]  ;;  %v196_v5 = vsel %vm194_vm0, %v1346_v2, 0 }
  0x10   : > { %v250_v6 = vcombine.high %v1349_v4, %v1349_v4  ;;  %v255_v7 = vsel %vm194_vm0, %v1349_v4, 0  ;;  %v1353_v8 = vld.sshfl [vmem:[%s1489_s19 + $0x8] sm:$0x33 pattern:$0x76325410] }
  0x11   : > { %1347 = vmatprep.subr.msk.bf16.mxu0 %vm194_vm0, %v189_v3  ;;  %v311_v10 = vcombine.high %v1353_v8, %v1353_v8  ;;  %v1365_v11 = vld.sshfl [vmem:[%s1489_s19 + $0xc] sm:$0x33 pattern:$0x76325410]  ;;  %v316_v13 = vsel %vm194_vm0, %v1353_v8, 0 }
  0x12   : > { %1350 = vmatprep.subr.msk.bf16.mxu1 %vm194_vm0, %v250_v6  ;;  %216 = vmatpush1.bf16.msra.mxu0 %v196_v5  ;;  %v499_v14 = vcombine.high %v1365_v11, %v1365_v11  ;;  %v501_v16 = vsel %vm194_vm0, %v1365_v11, 0  ;;  %v1379_v17 = vld.sshfl [vmem:[%s1489_s19 + $0x10] sm:$0x33 pattern:$0x76325410] }
  0x13   : > { %275 = vmatpush1.bf16.msra.mxu1 %v255_v7  ;;  %1354 = vmatprep.subr.msk.bf16.mxu0 %vm194_vm0, %v311_v10  ;;  %v680_v18 = vcombine.high %v1379_v17, %v1379_v17  ;;  %v1393_v19 = vld.sshfl [vmem:[%s1489_s19 + $0x14] sm:$0x33 pattern:$0x76325410]  ;;  %v682_v20 = vsel %vm194_vm0, %v1379_v17, 0 }
  0x14   : > { %1359 = vmatprep.subr.msk.bf16.mxu1 %vm194_vm0, %v311_v10  ;;  %v861_v21 = vcombine.high %v1393_v19, %v1393_v19  ;;  %v863_v22 = vsel %vm194_vm0, %v1393_v19, 0  ;;  %v1407_v23 = vld.sshfl [vmem:[%s1489_s19 + $0x18] sm:$0x33 pattern:$0x76325410] }
  0x15   : > { %1348 = vmatmul.mubr.msk.bf16.vlgmr.msra.gmra.mxu0 %vm190_vm1, %v1500_v9  ;;  %v1042_v24 = vcombine.high %v1407_v23, %v1407_v23  ;;  %v1421_v25 = vld.sshfl [vmem:[%s1489_s19 + $0x1c] sm:$0x33 pattern:$0x76325410]  ;;  %v1044_v26 = vsel %vm194_vm0, %v1407_v23, 0 }
  0x16   : > { %1351 = vmatmul.mubr.msk.bf16.vlgmr.msra.gmra.mxu1 %vm190_vm1, %v1507_v12  ;;  %336 = vmatpush1.bf16.msra.mxu0 %v316_v13  ;;  %v1223_v27 = vcombine.high %v1421_v25, %v1421_v25  ;;  %v1225_v28 = vsel %vm194_vm0, %v1421_v25, 0 }
  0x17   : > { %407 = vmatpush1.bf16.msra.mxu1 %v316_v13  ;;  %353 = vmatprep.mubr.bf16.mxu0 %v1448_v0 }
  0x18   : > { %424 = vmatprep.mubr.bf16.mxu1 %v1448_v0  ;;  %1362 = vmatprep.subr.msk.bf16.mxu0 %vm194_vm0, %v189_v3 }
  0x19   : > { %1366 = vmatprep.subr.msk.bf16.mxu1 %vm194_vm0, %v499_v14 }
  0x1d   : > { %1355 = vmatmul.mubr.msk.bf16.vlgmr.msra.gmra.mxu0 %vm190_vm1, %v1523_v15 }
  0x1e   : > { %1360 = vmatmul.mubr.msk.bf16.vlgmr.msra.gmra.mxu1 %vm190_vm1, %v1500_v9  ;;  %463 = vmatpush1.bf16.msra.mxu0 %v196_v5 }
  0x1f   : > { %521 = vmatpush1.bf16.msra.mxu1 %v501_v16  ;;  %480 = vmatprep.mubr.bf16.mxu0 %v1448_v0 }
  0x20   : > { %538 = vmatprep.mubr.bf16.mxu1 %v1448_v0  ;;  %1373 = vmatprep.subr.msk.bf16.mxu0 %vm194_vm0, %v499_v14 }
  0x21   : > { %1376 = vmatprep.subr.msk.bf16.mxu1 %vm194_vm0, %v311_v10 }
  0x25   : > { %1363 = vmatmul.mubr.msk.bf16.vlgmr.msra.gmra.mxu0 %vm190_vm1, %v1507_v12 }
  0x26   : > { %1367 = vmatmul.mubr.msk.bf16.vlgmr.msra.gmra.mxu1 %vm190_vm1, %v1523_v15  ;;  %588 = vmatpush1.bf16.msra.mxu0 %v501_v16 }
  0x27   : > { %644 = vmatpush1.bf16.msra.mxu1 %v316_v13  ;;  %605 = vmatprep.mubr.bf16.mxu0 %v1448_v0 }
  0x28   : > { %661 = vmatprep.mubr.bf16.mxu1 %v1448_v0  ;;  %1380 = vmatprep.subr.msk.bf16.mxu0 %vm194_vm0, %v680_v18 }
  0x29   : > { %1387 = vmatprep.subr.msk.bf16.mxu1 %vm194_vm0, %v680_v18 }
  0x2d   : > { %1374 = vmatmul.mubr.msk.bf16.vlgmr.msra.gmra.mxu0 %vm190_vm1, %v1500_v9 }
  0x2e   : > { %1377 = vmatmul.mubr.msk.bf16.vlgmr.msra.gmra.mxu1 %vm190_vm1, %v1507_v12  ;;  %702 = vmatpush1.bf16.msra.mxu0 %v682_v20 }
  0x2f   : > { %769 = vmatpush1.bf16.msra.mxu1 %v682_v20  ;;  %719 = vmatprep.mubr.bf16.mxu0 %v1448_v0 }
  0x30   : > { %786 = vmatprep.mubr.bf16.mxu1 %v1448_v0  ;;  %1390 = vmatprep.subr.msk.bf16.mxu0 %vm194_vm0, %v499_v14 }
  0x31   : > { %1394 = vmatprep.subr.msk.bf16.mxu1 %vm194_vm0, %v861_v21 }
  0x35   : > { %1381 = vmatmul.mubr.msk.bf16.vlgmr.msra.gmra.mxu0 %vm190_vm1, %v1523_v15 }
  0x36   : > { %1388 = vmatmul.mubr.msk.bf16.vlgmr.msra.gmra.mxu1 %vm190_vm1, %v1500_v9  ;;  %825 = vmatpush1.bf16.msra.mxu0 %v501_v16 }
  0x37   : > { %883 = vmatpush1.bf16.msra.mxu1 %v863_v22  ;;  %842 = vmatprep.mubr.bf16.mxu0 %v1448_v0 }
  0x38   : > { %900 = vmatprep.mubr.bf16.mxu1 %v1448_v0  ;;  %1401 = vmatprep.subr.msk.bf16.mxu0 %vm194_vm0, %v861_v21 }
  0x39   : > { %1404 = vmatprep.subr.msk.bf16.mxu1 %vm194_vm0, %v680_v18 }
  0x3d   : > { %1391 = vmatmul.mubr.msk.bf16.vlgmr.msra.gmra.mxu0 %vm190_vm1, %v1507_v12 }
  0x3e   : > { %1395 = vmatmul.mubr.msk.bf16.vlgmr.msra.gmra.mxu1 %vm190_vm1, %v1523_v15  ;;  %950 = vmatpush1.bf16.msra.mxu0 %v863_v22 }
  0x3f   : > { %1006 = vmatpush1.bf16.msra.mxu1 %v682_v20  ;;  %967 = vmatprep.mubr.bf16.mxu0 %v1448_v0 }
  0x40   : > { %1023 = vmatprep.mubr.bf16.mxu1 %v1448_v0  ;;  %1408 = vmatprep.subr.msk.bf16.mxu0 %vm194_vm0, %v1042_v24 }
  0x41   : > { %1415 = vmatprep.subr.msk.bf16.mxu1 %vm194_vm0, %v1042_v24 }
  0x45   : > { %1402 = vmatmul.mubr.msk.bf16.vlgmr.msra.gmra.mxu0 %vm190_vm1, %v1500_v9 }
  0x46   : > { %1405 = vmatmul.mubr.msk.bf16.vlgmr.msra.gmra.mxu1 %vm190_vm1, %v1507_v12  ;;  %1064 = vmatpush1.bf16.msra.mxu0 %v1044_v26 }
  0x47   : > { %1131 = vmatpush1.bf16.msra.mxu1 %v1044_v26  ;;  %1081 = vmatprep.mubr.bf16.mxu0 %v1448_v0 }
  0x48   : > { %1148 = vmatprep.mubr.bf16.mxu1 %v1448_v0  ;;  %1418 = vmatprep.subr.msk.bf16.mxu0 %vm194_vm0, %v861_v21 }
  0x49   : > { %1422 = vmatprep.subr.msk.bf16.mxu1 %vm194_vm0, %v1223_v27 }
  0x4d   : > { %1409 = vmatmul.mubr.msk.bf16.vlgmr.msra.gmra.mxu0 %vm190_vm1, %v1523_v15 }
  0x4e   : > { %1416 = vmatmul.mubr.msk.bf16.vlgmr.msra.gmra.mxu1 %vm190_vm1, %v1500_v9  ;;  %1187 = vmatpush1.bf16.msra.mxu0 %v863_v22 }
  0x4f   : > { %1245 = vmatpush1.bf16.msra.mxu1 %v1225_v28  ;;  %1204 = vmatprep.mubr.bf16.mxu0 %v1448_v0 }
  0x50   : > { %1262 = vmatprep.mubr.bf16.mxu1 %v1448_v0 }
  0x55   : > { %1419 = vmatmul.mubr.msk.bf16.vlgmr.msra.gmra.mxu0 %vm190_vm1, %v1507_v12 }
  0x56   : > { %1423 = vmatmul.mubr.msk.bf16.vlgmr.msra.gmra.mxu1 %vm190_vm1, %v1523_v15 }
  0x89   : > { %v1592_v39 = vpop.permute.xlu0 %366 }
  0xd5   : > { %v235_v29 = vpop.f32.mrf.mxu0 }
  0xd6   : > { %v294_v30 = vpop.f32.mrf.mxu1 }
  0xd7   : > { %v237_v31 = vpop.f32.mrf.mxu0  ;;  %v295_v36 = vadd.f32 %v294_v30, %v235_v29 }
  0xd8   : > { %v296_v32 = vpop.f32.mrf.mxu1 }
  0xd9   : > { %v239_v33 = vpop.f32.mrf.mxu0  ;;  %v297_v40 = vadd.f32 %v296_v32, %v237_v31 }
  0xda   : > { %v298_v34 = vpop.f32.mrf.mxu1 }
  0xdb   : > { %v240_v35 = vpop.f32.mrf.mxu0 }
  0xdc   : > { %v299_v37 = vpop.f32.mrf.mxu1 }
  0xdd   : > { %v355_v38 = vpop.f32.mrf.mxu0 }
  0xde   : > { %v362_v41 = vadd.f32 %v355_v38, %v295_v36  ;;  %v426_v42 = vpop.f32.mrf.mxu1 }
  0xdf   : > { %v357_v43 = vpop.f32.mrf.mxu0 }
  0xe0   : > { %v369_v44 = vadd.f32 %v1592_v39, %v362_v41  ;;  %v363_v45 = vadd.f32 %v357_v43, %v297_v40  ;;  %v428_v46 = vpop.f32.mrf.mxu1 }
  0xe1   : > { %v359_v47 = vpop.f32.mrf.mxu0 }
  0xe2   : > { %v371_v48 = vmax.f32 %v369_v44, 0.0  ;;  %v370_v49 = vadd.f32 %v1592_v39, %v363_v45  ;;  %v430_v50 = vpop.f32.mrf.mxu1 }
  0xe3   : > { %v360_v51 = vpop.f32.mrf.mxu0 }
  0xe4   : > { %373 = vst [vmem:[%s1599_s29] sm:$0xff] %v371_v48  ;;  %v372_v52 = vmax.f32 %v370_v49, 0.0  ;;  %v431_v53 = vpop.f32.mrf.mxu1 }
  0xe5   : > { %v482_v54 = vpop.f32.mrf.mxu0 }
  0xe6   : > { %374 = vst [vmem:[%s1599_s29 + $0x8] sm:$0xff] %v372_v52  ;;  %v483_v55 = vadd.f32 %v482_v54, %v426_v42  ;;  %v540_v56 = vpop.f32.mrf.mxu1 }
  0xe7   : > { %v484_v57 = vpop.f32.mrf.mxu0 }
  0xe8   : > { %v547_v58 = vadd.f32 %v540_v56, %v483_v55  ;;  %v485_v59 = vadd.f32 %v484_v57, %v428_v46  ;;  %v542_v60 = vpop.f32.mrf.mxu1 }
  0xe9   : > { %v486_v61 = vpop.f32.mrf.mxu0 }
  0xea   : > { %v549_v62 = vadd.f32 %v547_v58, %v1592_v39  ;;  %v548_v63 = vadd.f32 %v542_v60, %v485_v59  ;;  %v544_v0 = vpop.f32.mrf.mxu1 }
  0xeb   : > { %v487_v1 = vpop.f32.mrf.mxu0 }
  0xec   : > { %v551_v2 = vmax.f32 %v549_v62, 0.0  ;;  %v550_v3 = vadd.f32 %v548_v63, %v1592_v39  ;;  %v545_v4 = vpop.f32.mrf.mxu1 }
  0xed   : > { %v607_v5 = vpop.f32.mrf.mxu0 }
  0xee   : > { %1368 = vst [vmem:[%s1599_s29 + $0x10] sm:$0xff] %v551_v2  ;;  %v552_v6 = vmax.f32 %v550_v3, 0.0  ;;  %v663_v7 = vpop.f32.mrf.mxu1 }
  0xef   : > { %v609_v8 = vpop.f32.mrf.mxu0  ;;  %v664_v13 = vadd.f32 %v663_v7, %v607_v5 }
  0xf0   : > { %1369 = vst [vmem:[%s1599_s29 + $0x18] sm:$0xff] %v552_v6  ;;  %v665_v9 = vpop.f32.mrf.mxu1 }
  0xf1   : > { %v611_v10 = vpop.f32.mrf.mxu0  ;;  %v666_v16 = vadd.f32 %v665_v9, %v609_v8 }
  0xf2   : > { %v667_v11 = vpop.f32.mrf.mxu1 }
  0xf3   : > { %v612_v12 = vpop.f32.mrf.mxu0 }
  0xf4   : > { %v668_v14 = vpop.f32.mrf.mxu1 }
  0xf5   : > { %v721_v15 = vpop.f32.mrf.mxu0 }
  0xf6   : > { %v728_v17 = vadd.f32 %v721_v15, %v664_v13  ;;  %v788_v18 = vpop.f32.mrf.mxu1 }
  0xf7   : > { %v723_v19 = vpop.f32.mrf.mxu0 }
  0xf8   : > { %v730_v20 = vadd.f32 %v728_v17, %v1592_v39  ;;  %v729_v21 = vadd.f32 %v723_v19, %v666_v16  ;;  %v790_v22 = vpop.f32.mrf.mxu1 }
  0xf9   : > { %v725_v23 = vpop.f32.mrf.mxu0 }
  0xfa   : > { %v732_v24 = vmax.f32 %v730_v20, 0.0  ;;  %v731_v25 = vadd.f32 %v729_v21, %v1592_v39  ;;  %v792_v26 = vpop.f32.mrf.mxu1 }
  0xfb   : > { %v726_v27 = vpop.f32.mrf.mxu0 }
  0xfc   : > { %1382 = vst [vmem:[%s1599_s29 + $0x20] sm:$0xff] %v732_v24  ;;  %v733_v28 = vmax.f32 %v731_v25, 0.0  ;;  %v793_v29 = vpop.f32.mrf.mxu1 }
  0xfd   : > { %v844_v30 = vpop.f32.mrf.mxu0 }
  0xfe   : > { %1383 = vst [vmem:[%s1599_s29 + $0x28] sm:$0xff] %v733_v28  ;;  %v845_v31 = vadd.f32 %v844_v30, %v788_v18  ;;  %v902_v32 = vpop.f32.mrf.mxu1 }
  0xff   : > { %v846_v33 = vpop.f32.mrf.mxu0 }
 0x100   : > { %v909_v34 = vadd.f32 %v902_v32, %v845_v31  ;;  %v847_v35 = vadd.f32 %v846_v33, %v790_v22  ;;  %v904_v36 = vpop.f32.mrf.mxu1 }
 0x101   : > { %v848_v37 = vpop.f32.mrf.mxu0 }
 0x102   : > { %v911_v38 = vadd.f32 %v909_v34, %v1592_v39  ;;  %v910_v40 = vadd.f32 %v904_v36, %v847_v35  ;;  %v906_v41 = vpop.f32.mrf.mxu1 }
 0x103   : > { %v849_v42 = vpop.f32.mrf.mxu0 }
 0x104   : > { %v913_v43 = vmax.f32 %v911_v38, 0.0  ;;  %v912_v44 = vadd.f32 %v910_v40, %v1592_v39  ;;  %v907_v45 = vpop.f32.mrf.mxu1 }
 0x105   : > { %v969_v46 = vpop.f32.mrf.mxu0 }
 0x106   : > { %1396 = vst [vmem:[%s1599_s29 + $0x30] sm:$0xff] %v913_v43  ;;  %v914_v47 = vmax.f32 %v912_v44, 0.0  ;;  %v1025_v48 = vpop.f32.mrf.mxu1 }
 0x107   : > { %v971_v49 = vpop.f32.mrf.mxu0  ;;  %v1026_v54 = vadd.f32 %v1025_v48, %v969_v46 }
 0x108   : > { %1397 = vst [vmem:[%s1599_s29 + $0x38] sm:$0xff] %v914_v47  ;;  %v1027_v50 = vpop.f32.mrf.mxu1 }
 0x109   : > { %v973_v51 = vpop.f32.mrf.mxu0  ;;  %v1028_v57 = vadd.f32 %v1027_v50, %v971_v49 }
 0x10a   : > { %v1029_v52 = vpop.f32.mrf.mxu1 }
 0x10b   : > { %v974_v53 = vpop.f32.mrf.mxu0 }
 0x10c   : > { %v1030_v55 = vpop.f32.mrf.mxu1 }
 0x10d   : > { %v1083_v56 = vpop.f32.mrf.mxu0 }
 0x10e   : > { %v1090_v58 = vadd.f32 %v1083_v56, %v1026_v54  ;;  %v1150_v59 = vpop.f32.mrf.mxu1 }
 0x10f   : > { %v1085_v60 = vpop.f32.mrf.mxu0 }
 0x110   : > { %v1092_v61 = vadd.f32 %v1090_v58, %v1592_v39  ;;  %v1091_v62 = vadd.f32 %v1085_v60, %v1028_v57  ;;  %v1152_v63 = vpop.f32.mrf.mxu1 }
 0x111   : > { %v1087_v0 = vpop.f32.mrf.mxu0 }
 0x112   : > { %v1094_v1 = vmax.f32 %v1092_v61, 0.0  ;;  %v1093_v2 = vadd.f32 %v1091_v62, %v1592_v39  ;;  %v1154_v3 = vpop.f32.mrf.mxu1 }
 0x113   : > { %v1088_v4 = vpop.f32.mrf.mxu0 }
 0x114   : > { %1410 = vst [vmem:[%s1599_s29 + $0x40] sm:$0xff] %v1094_v1  ;;  %v1095_v5 = vmax.f32 %v1093_v2, 0.0  ;;  %v1155_v6 = vpop.f32.mrf.mxu1 }
 0x115   : > { %v1206_v7 = vpop.f32.mrf.mxu0 }
 0x116   : > { %1411 = vst [vmem:[%s1599_s29 + $0x48] sm:$0xff] %v1095_v5  ;;  %v1207_v8 = vadd.f32 %v1206_v7, %v1150_v59  ;;  %v1264_v9 = vpop.f32.mrf.mxu1 }
 0x117   : > { %v1208_v10 = vpop.f32.mrf.mxu0 }
 0x118   : > { %v1271_v11 = vadd.f32 %v1264_v9, %v1207_v8  ;;  %v1209_v12 = vadd.f32 %v1208_v10, %v1152_v63  ;;  %v1266_v13 = vpop.f32.mrf.mxu1 }
 0x119   : > { %v1210_v14 = vpop.f32.mrf.mxu0 }
 0x11a   : > { %v1273_v15 = vadd.f32 %v1271_v11, %v1592_v39  ;;  %v1272_v16 = vadd.f32 %v1266_v13, %v1209_v12  ;;  %v1268_v17 = vpop.f32.mrf.mxu1 }
 0x11b   : > { %v1211_v18 = vpop.f32.mrf.mxu0 }
 0x11c   : > { %v1275_v19 = vmax.f32 %v1273_v15, 0.0  ;;  %v1274_v20 = vadd.f32 %v1272_v16, %v1592_v39  ;;  %v1269_v21 = vpop.f32.mrf.mxu1 }
 0x11e   : > { %1424 = vst [vmem:[%s1599_s29 + $0x50] sm:$0xff] %v1275_v19  ;;  %v1276_v22 = vmax.f32 %v1274_v20, 0.0 }
 0x120   : > { %1425 = vst [vmem:[%s1599_s29 + $0x58] sm:$0xff] %v1276_v22 }
 0x121 PF: > { %s13_s12 = sadd.s32 1, %s1446_s12  }
 0x122   : > { %p10_p4 = scmp.ge.s32.totalorder %s13_s12, 4  }
 0x124   :  { %12 = sbr.rel (!%p10_p4) target bundleno = 1 (0x1), region = 76 }

</bundles_post_ra>
